<compile_context>
chip_gen: v7x
topology: tpu7x:2x2x1
jax: 0.10.0
libtpu: 0.0.40
codegen_flags: <defaults>
</compile_context>

<pallas_src>
import numpy as np
import jax
import jax.numpy as jnp
from jax import lax
from jax.experimental import pallas as pl
from jax.experimental.pallas import tpu as pltpu

# ----------------------------- config ---------------------------------------
B, T, D, H = 2, 8, 32, 32          # batch, max_length, word_dim, tree_hidden_dim
RANK_HIDDEN = 128                  # tree_rank hidden width

# Tree-composition slot layout (global slot numbering inside the compose kernel):
#   0 .. T*B-1          : leaf states, row (t, b) -> t*B + b (time-major)
#   Z_SLOT              : all-zeros slot (stands in for None left/right states)
#   SPARE_SLOT          : dummy (padding) compositions write here; never read
#   FIRST_INTERNAL ...  : internal-node outputs (<= B*(T-1) of them)
Z_SLOT = T * B
SPARE_SLOT = T * B + 1
FIRST_INTERNAL = T * B + 2
MAX_LEVELS = T - 1                 # static bound on per-sentence composition chain
MAX_INTERNAL = B * (T - 1)
NSLOTS = FIRST_INTERNAL + MAX_INTERNAL
SCHED_LEN = MAX_LEVELS * B * 4     # flat (l, r, m, out) per (level, batch)


# ----------------------------- Pallas kernels -------------------------------
def leaf_rank_kernel(x_ref, wih_ref, whh_ref, b_ref, rw1_ref, rw2_ref,
                     h_ref, c_ref, sc_ref):
    """Fused leaf-LSTM (unrolled over T) + tree_rank scorer.

    x_ref  : (T*B, D)   time-major flattened embeddings, row = t*B + b
    wih_ref: (D, 4H)    W_ih^T      whh_ref: (H, 4H)  W_hh^T     b_ref: (1, 4H)
    rw1_ref: (D, 128)   rw2_ref: (1, 128)
    h_ref  : (T*B, H)   leaf h states      c_ref: (T*B, H) leaf c states
    sc_ref : (1, T*B)   rank scores (lane-dense)
    """
    x = x_ref[...]                                   # (T*B, D)
    # Input projection hoisted out of the serial recurrence: one batched matmul
    # (fills 16 sublanes) instead of a per-step concat + wider K on the carry chain.
    gx = jnp.dot(x, wih_ref[...], preferred_element_type=jnp.float32) + b_ref[...]  # (T*B, 4H)
    whh = whh_ref[...]                               # (H, 4H)

    # Lane mask selecting the g-gate chunk (tanh) vs i/f/o chunks (sigmoid);
    # activations run once on the full 128-lane tile (EUP slot), hoisted mask.
    lane = lax.broadcasted_iota(jnp.int32, (B, 4 * H), 1)
    is_g = (lane >= 2 * H) & (lane < 3 * H)

    h = jnp.zeros((B, H), jnp.float32)
    c = jnp.zeros((B, H), jnp.float32)
    for t in range(T):                               # static unroll (serial carry)
        gates = gx[t * B:(t + 1) * B, :] + jnp.dot(
            h, whh, preferred_element_type=jnp.float32)          # (B, 4H)
        act = jnp.where(is_g, jnp.tanh(gates), jax.nn.sigmoid(gates))
        # PyTorch LSTMCell gate order: i, f, g, o
        i_g = act[:, 0 * H:1 * H]
        f_g = act[:, 1 * H:2 * H]
        g_g = act[:, 2 * H:3 * H]
        o_g = act[:, 3 * H:4 * H]
        c = f_g * c + i_g * g_g
        h = o_g * jnp.tanh(c)
        h_ref[t * B:(t + 1) * B, :] = h
        c_ref[t * B:(t + 1) * B, :] = c

    # tree_rank: relu(x @ W1) contracted against w2 along the 128-wide hidden dim,
    # emitted lane-dense as (1, T*B).
    hidden = jnp.maximum(
        jnp.dot(x, rw1_ref[...], preferred_element_type=jnp.float32), 0.0)  # (T*B, 128)
    sc_ref[...] = lax.dot_general(
        rw2_ref[...], hidden,
        dimension_numbers=(((1,), (1,)), ((), ())),
        preferred_element_type=jnp.float32)                                  # (1, T*B)


def compose_kernel(sched_ref, nlev_ref, root_ref,        # SMEM schedule (scalar prefetch)
                   leaf_h_ref, leaf_c_ref, w_ref, b_ref,  # VMEM inputs (resident)
                   out_h_ref, out_c_ref,                  # (B, H) outputs
                   st_h, st_c):                           # (NSLOTS, H) VMEM scratches
    """All TriPadLSTM compositions for the whole batch in ONE kernel invocation.

    Each pl.loop iteration processes one tree LEVEL for the whole batch: gathers
    B (left,right,mid) node states, does one fused (B,3H)@(3H,5H) matmul, and
    scatters the B new node states back into the slot table.
    """
    # TODO(synk): TriPadLSTMLayer source not in the given snippet; this reproduces the
    # reference AR-Tree cell (5 chunks i, fl, fr, fm, g; +1 forget bias; h = tanh(c)),
    # with None left/right states treated as zeros.
    st_h[...] = jnp.zeros((NSLOTS, H), jnp.float32)
    st_c[...] = jnp.zeros((NSLOTS, H), jnp.float32)
    st_h[pl.ds(0, T * B), :] = leaf_h_ref[...]
    st_c[pl.ds(0, T * B), :] = leaf_c_ref[...]

    w = w_ref[...]                                   # (3H, 5H)
    bias = b_ref[...]                                # (1, 5H)

    @pl.loop(0, nlev_ref[0])                         # dynamic trip count from SMEM
    def _level(s):
        hls, hrs, hms, cls, crs, cms, outs = [], [], [], [], [], [], []
        for b in range(B):                           # static unroll over batch
            base = (s * B + b) * 4
            l = sched_ref[base + 0]
            r = sched_ref[base + 1]
            m = sched_ref[base + 2]
            outs.append(sched_ref[base + 3])
            hls.append(st_h[pl.ds(l, 1), :]); cls.append(st_c[pl.ds(l, 1), :])
            hrs.append(st_h[pl.ds(r, 1), :]); crs.append(st_c[pl.ds(r, 1), :])
            hms.append(st_h[pl.ds(m, 1), :]); cms.append(st_c[pl.ds(m, 1), :])
        hl = jnp.concatenate(hls, axis=0); cl = jnp.concatenate(cls, axis=0)   # (B, H)
        hr = jnp.concatenate(hrs, axis=0); cr = jnp.concatenate(crs, axis=0)
        hm = jnp.concatenate(hms, axis=0); cm = jnp.concatenate(cms, axis=0)

        xin = jnp.concatenate([hl, hr, hm], axis=1)                            # (B, 3H)
        v = jnp.dot(xin, w, preferred_element_type=jnp.float32) + bias         # (B, 5H)
        i_g = v[:, 0 * H:1 * H]
        fl = v[:, 1 * H:2 * H]
        fr = v[:, 2 * H:3 * H]
        fm = v[:, 3 * H:4 * H]
        g = v[:, 4 * H:5 * H]
        c_new = (cl * jax.nn.sigmoid(fl + 1.0)
                 + cr * jax.nn.sigmoid(fr + 1.0)
                 + cm * jax.nn.sigmoid(fm + 1.0)
                 + jax.nn.sigmoid(i_g) * jnp.tanh(g))
        h_new = jnp.tanh(c_new)

        for b in range(B):
            st_h[pl.ds(outs[b], 1), :] = h_new[b:b + 1, :]
            st_c[pl.ds(outs[b], 1), :] = c_new[b:b + 1, :]

    # Gather per-batch root states (leaf slot for length-1 sentences).
    for b in range(B):
        rs = root_ref[b]
        out_h_ref[b:b + 1, :] = st_h[pl.ds(rs, 1), :]
        out_c_ref[b:b + 1, :] = st_c[pl.ds(rs, 1), :]


# ----------------------------- kernel wrappers -------------------------------
def run_leaf_and_rank(x_flat, params):
    """x_flat: (T*B, D) time-major -> (h (T*B,H), c (T*B,H), scores (1,T*B))."""
    return pl.pallas_call(
        leaf_rank_kernel,
        out_shape=(jax.ShapeDtypeStruct((T * B, H), jnp.float32),
                   jax.ShapeDtypeStruct((T * B, H), jnp.float32),
                   jax.ShapeDtypeStruct((1, T * B), jnp.float32)),
    )(x_flat, params["w_ih"], params["w_hh"], params["b"],
      params["rank_w1"], params["rank_w2"])


def run_compose(leaf_h, leaf_c, sched, n_levels, root_slot, params):
    """All tree compositions in one launch. Returns (h_res (B,H), c_res (B,H))."""
    out_h, out_c = pl.pallas_call(
        compose_kernel,
        out_shape=(jax.ShapeDtypeStruct((B, H), jnp.float32),
                   jax.ShapeDtypeStruct((B, H), jnp.float32)),
        grid_spec=pltpu.PrefetchScalarGridSpec(
            num_scalar_prefetch=3,
            grid=(1,),
            in_specs=[
                pl.BlockSpec((T * B, H), lambda i, *_: (0, 0)),       # leaf h
                pl.BlockSpec((T * B, H), lambda i, *_: (0, 0)),       # leaf c
                pl.BlockSpec((3 * H, 5 * H), lambda i, *_: (0, 0)),   # comp_w
                pl.BlockSpec((1, 5 * H), lambda i, *_: (0, 0)),       # comp_b
            ],
            out_specs=(pl.BlockSpec((B, H), lambda i, *_: (0, 0)),
                       pl.BlockSpec((B, H), lambda i, *_: (0, 0))),
            scratch_shapes=[pltpu.VMEM((NSLOTS, H), jnp.float32),
                            pltpu.VMEM((NSLOTS, H), jnp.float32)],
        ),
        compiler_params=pltpu.CompilerParams(dimension_semantics=("arbitrary",)),
    )(sched, n_levels, root_slot, leaf_h, leaf_c, params["comp_w"], params["comp_b"])
    return out_h, out_c


# ----------------------------- host-side greedy schedule ---------------------
class Node:
    def __init__(self, word, left=None, right=None):
        self.word, self.left, self.right = word, left, right


def build_schedule(scores_np, length_np, sentence_word):
    """Greedy (eval mode) STG_AR_Tree.build, emitted as a per-level, batch-packed
    composition schedule (int32 slot indices) plus the Node structure.

    Level s of the schedule holds up to B independent compositions (one per batch
    element); dummy entries read Z_SLOT and write SPARE_SLOT (never read back).
    """
    sched = np.zeros((MAX_LEVELS, B, 4), np.int32)
    sched[..., 0:3] = Z_SLOT
    sched[..., 3] = SPARE_SLOT
    root_slot = np.zeros((B,), np.int32)
    structure = []
    next_internal = FIRST_INTERNAL
    n_levels = 0

    for b in range(B):
        L = int(length_np[b])
        assert 1 <= L <= T, "length must be in [1, max_length]"
        sentence = [str(w) for w in sentence_word[b]]
        steps = []                                   # post-order (l, r, m, out) list

        def leaf(pos, b=b):
            return pos * B + b

        def build(start, end):
            nonlocal next_internal
            if end == start:
                return None, None
            if end == start + 1:
                return leaf(start), Node(sentence[start])
            # greedy_select == argmax over the span's precomputed per-token scores
            pos = start + int(np.argmax(scores_np[b, start:end]))
            lslot, ltree = build(start, pos)
            rslot, rtree = build(pos + 1, end)
            oslot = next_internal
            next_internal += 1
            steps.append((Z_SLOT if lslot is None else lslot,
                          Z_SLOT if rslot is None else rslot,
                          leaf(pos), oslot))
            return oslot, Node(sentence[pos], ltree, rtree)

        rslot_b, tree = build(0, L)
        structure.append(tree)
        root_slot[b] = leaf(0) if L == 1 else rslot_b
        for k, step in enumerate(steps):             # post-order => deps satisfied level-wise
            sched[k, b, :] = step
        n_levels = max(n_levels, len(steps))

    return (jnp.asarray(sched.reshape(-1), dtype=jnp.int32),
            jnp.asarray([n_levels], dtype=jnp.int32),
            jnp.asarray(root_slot, dtype=jnp.int32),
            structure)


# ----------------------------- forward ---------------------------------------
def stg_ar_tree_forward(sentence_embedding, sentence_word, length, params):
    """Inference forward. Returns (h_res (B,H), c_res (B,H), structure)."""
    # TODO(synk): training-mode gumbel_softmax sampling path and the 'bilstm' /
    # rank_input='h' config branches are not implemented; this is eval (greedy, lstm, 'w').
    x_flat = jnp.transpose(sentence_embedding, (1, 0, 2)).reshape(T * B, D)  # time-major
    leaf_h, leaf_c, scores = run_leaf_and_rank(x_flat, params)   # one launch

    # Single host sync: only tiny scores + lengths cross to host (needed for the
    # data-dependent greedy recursion + Python Node structure); leaf h/c stay on-device.
    scores_host, length_host = jax.device_get((scores, length))
    scores_np = np.asarray(scores_host).reshape(T, B).T          # (B, T), row = t*B + b
    sched, n_levels, root_slot, structure = build_schedule(
        scores_np, np.asarray(length_host), sentence_word)

    h_res, c_res = run_compose(leaf_h, leaf_c, sched, n_levels, root_slot, params)
    return h_res, c_res, structure


# ----------------------------- deterministic parameters ----------------------
def init_params(key):
    ks = jax.random.split(key, 5)
    # LSTMCell: kaiming_normal(W_ih), orthogonal(W_hh), biases 0 with forget-gate bias 1.
    w_ih = jax.random.normal(ks[0], (4 * H, D), jnp.float32) * np.sqrt(2.0 / D)
    w_hh = jax.nn.initializers.orthogonal()(ks[1], (4 * H, H), jnp.float32)
    b = jnp.zeros((4 * H,), jnp.float32).at[H:2 * H].set(1.0)   # b_ih + b_hh, f-gate = 1
    # TriPadLSTMLayer comp_linear: Linear(3H, 5H).
    comp_w = jax.random.normal(ks[2], (5 * H, 3 * H), jnp.float32) * np.sqrt(2.0 / (3 * H))
    comp_b = jnp.zeros((5 * H,), jnp.float32)
    # tree_rank: Linear(D,128,no bias) + Linear(128,1,no bias), kaiming weights.
    rank_w1 = jax.random.normal(ks[3], (RANK_HIDDEN, D), jnp.float32) * np.sqrt(2.0 / D)
    rank_w2 = jax.random.normal(ks[4], (1, RANK_HIDDEN), jnp.float32) * np.sqrt(2.0 / RANK_HIDDEN)
    return dict(
        w_ih=w_ih.T,            # (D, 4H)
        w_hh=w_hh.T,            # (H, 4H)
        b=b[None, :],           # (1, 4H)
        comp_w=comp_w.T,        # (3H, 5H), input order [hl | hr | hm]
        comp_b=comp_b[None, :], # (1, 5H)
        rank_w1=rank_w1.T,      # (D, 128)
        rank_w2=rank_w2,        # (1, 128) row vector
    )


# ----------------------------- main ------------------------------------------
if __name__ == "__main__":
    key = jax.random.PRNGKey(0)
    k_param, k_emb = jax.random.split(key)
    params = init_params(k_param)

    sentence_embedding = jax.random.normal(k_emb, (B, T, D), jnp.float32)
    sentence_word = [[j + 100 * i for j in range(T)] for i in range(B)]   # word ids
    length = jnp.array([T, 5], dtype=jnp.int32)

    h_res, c_res, structure = stg_ar_tree_forward(sentence_embedding, sentence_word,
                                                  length, params)
    jax.block_until_ready((h_res, c_res))
    assert h_res.shape == (B, H) and c_res.shape == (B, H)
    assert all(isinstance(t, Node) for t in structure)
    print("KERNEL_OK")
</pallas_src>

<mosaic_0001>
module attributes {stable_mosaic.version = 11 : i64} {
  func.func @leaf_rank_kernel(%arg0: memref<16x32xf32, #tpu.memory_space<vmem>>, %arg1: memref<32x128xf32, #tpu.memory_space<vmem>>, %arg2: memref<32x128xf32, #tpu.memory_space<vmem>>, %arg3: memref<1x128xf32, #tpu.memory_space<vmem>>, %arg4: memref<32x128xf32, #tpu.memory_space<vmem>>, %arg5: memref<1x128xf32, #tpu.memory_space<vmem>>, %arg6: memref<16x32xf32, #tpu.memory_space<vmem>>, %arg7: memref<16x32xf32, #tpu.memory_space<vmem>>, %arg8: memref<1x16xf32, #tpu.memory_space<vmem>>) attributes {dimension_semantics = [], scalar_prefetch = 0 : i64, scratch_operands = 0 : i64, tpu.core_type = #tpu.core_type<tc>} {
    %c0 = arith.constant 0 : index
    %c0_0 = arith.constant 0 : index
    %0 = vector.load %arg0[%c0, %c0_0] : memref<16x32xf32, #tpu.memory_space<vmem>>, vector<16x32xf32>
    %c0_1 = arith.constant 0 : index
    %c0_2 = arith.constant 0 : index
    %1 = vector.load %arg1[%c0_1, %c0_2] : memref<32x128xf32, #tpu.memory_space<vmem>>, vector<32x128xf32>
    %cst = arith.constant dense<0.000000e+00> : vector<16x128xf32>
    %2 = tpu.matmul %0, %1, %cst {dimension_numbers = #tpu.dot_dimension_numbers<[1], [0], [0], [1], [0, 0, 1, 1], [], []>} : vector<16x32xf32>, vector<32x128xf32>, vector<16x128xf32> -> vector<16x128xf32>
    %c0_3 = arith.constant 0 : index
    %c0_4 = arith.constant 0 : index
    %3 = vector.load %arg3[%c0_3, %c0_4] : memref<1x128xf32, #tpu.memory_space<vmem>>, vector<1x128xf32>
    %4 = vector.broadcast %3 : vector<1x128xf32> to vector<16x128xf32>
    %5 = arith.addf %2, %4 : vector<16x128xf32>
    %c0_5 = arith.constant 0 : index
    %c0_6 = arith.constant 0 : index
    %6 = vector.load %arg2[%c0_5, %c0_6] : memref<32x128xf32, #tpu.memory_space<vmem>>, vector<32x128xf32>
    %7 = tpu.iota {dimensions = array<i32: 1>} : vector<2x128xi32>
    %c64_i32 = arith.constant 64 : i32
    %8 = vector.broadcast %c64_i32 : i32 to vector<2x128xi32>
    %9 = arith.cmpi sge, %7, %8 : vector<2x128xi32>
    %c96_i32 = arith.constant 96 : i32
    %10 = vector.broadcast %c96_i32 : i32 to vector<2x128xi32>
    %11 = arith.cmpi slt, %7, %10 : vector<2x128xi32>
    %12 = arith.andi %9, %11 : vector<2x128xi1>
    %cst_7 = arith.constant 0.000000e+00 : f32
    %13 = vector.broadcast %cst_7 : f32 to vector<2x32xf32>
    %cst_8 = arith.constant 0.000000e+00 : f32
    %14 = vector.broadcast %cst_8 : f32 to vector<2x32xf32>
    %15 = vector.extract_strided_slice %5 {offsets = [0, 0], sizes = [2, 128], strides = [1, 1]} : vector<16x128xf32> to vector<2x128xf32>
    %cst_9 = arith.constant dense<0.000000e+00> : vector<2x128xf32>
    %16 = tpu.matmul %13, %6, %cst_9 {dimension_numbers = #tpu.dot_dimension_numbers<[1], [0], [0], [1], [0, 0, 1, 1], [], []>} : vector<2x32xf32>, vector<32x128xf32>, vector<2x128xf32> -> vector<2x128xf32>
    %17 = arith.addf %15, %16 : vector<2x128xf32>
    %18 = math.tanh %17 : vector<2x128xf32>
    %19 = arith.negf %17 : vector<2x128xf32>
    %20 = math.exp %19 : vector<2x128xf32>
    %cst_10 = arith.constant 1.000000e+00 : f32
    %21 = vector.broadcast %cst_10 : f32 to vector<2x128xf32>
    %22 = arith.addf %21, %20 : vector<2x128xf32>
    %23 = arith.divf %21, %22 : vector<2x128xf32>
    %24 = arith.select %12, %18, %23 : vector<2x128xi1>, vector<2x128xf32>
    %25 = vector.extract_strided_slice %24 {offsets = [0, 0], sizes = [2, 32], strides = [1, 1]} : vector<2x128xf32> to vector<2x32xf32>
    %26 = vector.extract_strided_slice %24 {offsets = [0, 32], sizes = [2, 32], strides = [1, 1]} : vector<2x128xf32> to vector<2x32xf32>
    %27 = vector.extract_strided_slice %24 {offsets = [0, 64], sizes = [2, 32], strides = [1, 1]} : vector<2x128xf32> to vector<2x32xf32>
    %28 = vector.extract_strided_slice %24 {offsets = [0, 96], sizes = [2, 32], strides = [1, 1]} : vector<2x128xf32> to vector<2x32xf32>
    %29 = arith.mulf %26, %14 : vector<2x32xf32>
    %30 = arith.mulf %25, %27 : vector<2x32xf32>
    %31 = arith.addf %29, %30 : vector<2x32xf32>
    %32 = math.tanh %31 : vector<2x32xf32>
    %33 = arith.mulf %28, %32 : vector<2x32xf32>
    %c0_11 = arith.constant 0 : index
    %c0_12 = arith.constant 0 : index
    %34 = vector.load %arg6[%c0_11, %c0_12] : memref<16x32xf32, #tpu.memory_space<vmem>>, vector<2x32xf32>
    tpu.vector_store %arg6[%c0_11, %c0_12], %33 {strides = array<i32>} : memref<16x32xf32, #tpu.memory_space<vmem>>, vector<2x32xf32>,
    %c0_13 = arith.constant 0 : index
    %c0_14 = arith.constant 0 : index
    %35 = vector.load %arg7[%c0_13, %c0_14] : memref<16x32xf32, #tpu.memory_space<vmem>>, vector<2x32xf32>
    tpu.vector_store %arg7[%c0_13, %c0_14], %31 {strides = array<i32>} : memref<16x32xf32, #tpu.memory_space<vmem>>, vector<2x32xf32>,
    %36 = vector.extract_strided_slice %5 {offsets = [2, 0], sizes = [2, 128], strides = [1, 1]} : vector<16x128xf32> to vector<2x128xf32>
    %cst_15 = arith.constant dense<0.000000e+00> : vector<2x128xf32>
    %37 = tpu.matmul %33, %6, %cst_15 {dimension_numbers = #tpu.dot_dimension_numbers<[1], [0], [0], [1], [0, 0, 1, 1], [], []>} : vector<2x32xf32>, vector<32x128xf32>, vector<2x128xf32> -> vector<2x128xf32>
    %38 = arith.addf %36, %37 : vector<2x128xf32>
    %39 = math.tanh %38 : vector<2x128xf32>
    %40 = arith.negf %38 : vector<2x128xf32>
    %41 = math.exp %40 : vector<2x128xf32>
    %cst_16 = arith.constant 1.000000e+00 : f32
    %42 = vector.broadcast %cst_16 : f32 to vector<2x128xf32>
    %43 = arith.addf %42, %41 : vector<2x128xf32>
    %44 = arith.divf %42, %43 : vector<2x128xf32>
    %45 = arith.select %12, %39, %44 : vector<2x128xi1>, vector<2x128xf32>
    %46 = vector.extract_strided_slice %45 {offsets = [0, 0], sizes = [2, 32], strides = [1, 1]} : vector<2x128xf32> to vector<2x32xf32>
    %47 = vector.extract_strided_slice %45 {offsets = [0, 32], sizes = [2, 32], strides = [1, 1]} : vector<2x128xf32> to vector<2x32xf32>
    %48 = vector.extract_strided_slice %45 {offsets = [0, 64], sizes = [2, 32], strides = [1, 1]} : vector<2x128xf32> to vector<2x32xf32>
    %49 = vector.extract_strided_slice %45 {offsets = [0, 96], sizes = [2, 32], strides = [1, 1]} : vector<2x128xf32> to vector<2x32xf32>
    %50 = arith.mulf %47, %31 : vector<2x32xf32>
    %51 = arith.mulf %46, %48 : vector<2x32xf32>
    %52 = arith.addf %50, %51 : vector<2x32xf32>
    %53 = math.tanh %52 : vector<2x32xf32>
    %54 = arith.mulf %49, %53 : vector<2x32xf32>
    %c2 = arith.constant 2 : index
    %c0_17 = arith.constant 0 : index
    %55 = vector.load %arg6[%c2, %c0_17] : memref<16x32xf32, #tpu.memory_space<vmem>>, vector<2x32xf32>
    tpu.vector_store %arg6[%c2, %c0_17], %54 {strides = array<i32>} : memref<16x32xf32, #tpu.memory_space<vmem>>, vector<2x32xf32>,
    %c2_18 = arith.constant 2 : index
    %c0_19 = arith.constant 0 : index
    %56 = vector.load %arg7[%c2_18, %c0_19] : memref<16x32xf32, #tpu.memory_space<vmem>>, vector<2x32xf32>
    tpu.vector_store %arg7[%c2_18, %c0_19], %52 {strides = array<i32>} : memref<16x32xf32, #tpu.memory_space<vmem>>, vector<2x32xf32>,
    %57 = vector.extract_strided_slice %5 {offsets = [4, 0], sizes = [2, 128], strides = [1, 1]} : vector<16x128xf32> to vector<2x128xf32>
    %cst_20 = arith.constant dense<0.000000e+00> : vector<2x128xf32>
    %58 = tpu.matmul %54, %6, %cst_20 {dimension_numbers = #tpu.dot_dimension_numbers<[1], [0], [0], [1], [0, 0, 1, 1], [], []>} : vector<2x32xf32>, vector<32x128xf32>, vector<2x128xf32> -> vector<2x128xf32>
    %59 = arith.addf %57, %58 : vector<2x128xf32>
    %60 = math.tanh %59 : vector<2x128xf32>
    %61 = arith.negf %59 : vector<2x128xf32>
    %62 = math.exp %61 : vector<2x128xf32>
    %cst_21 = arith.constant 1.000000e+00 : f32
    %63 = vector.broadcast %cst_21 : f32 to vector<2x128xf32>
    %64 = arith.addf %63, %62 : vector<2x128xf32>
    %65 = arith.divf %63, %64 : vector<2x128xf32>
    %66 = arith.select %12, %60, %65 : vector<2x128xi1>, vector<2x128xf32>
    %67 = vector.extract_strided_slice %66 {offsets = [0, 0], sizes = [2, 32], strides = [1, 1]} : vector<2x128xf32> to vector<2x32xf32>
    %68 = vector.extract_strided_slice %66 {offsets = [0, 32], sizes = [2, 32], strides = [1, 1]} : vector<2x128xf32> to vector<2x32xf32>
    %69 = vector.extract_strided_slice %66 {offsets = [0, 64], sizes = [2, 32], strides = [1, 1]} : vector<2x128xf32> to vector<2x32xf32>
    %70 = vector.extract_strided_slice %66 {offsets = [0, 96], sizes = [2, 32], strides = [1, 1]} : vector<2x128xf32> to vector<2x32xf32>
    %71 = arith.mulf %68, %52 : vector<2x32xf32>
    %72 = arith.mulf %67, %69 : vector<2x32xf32>
    %73 = arith.addf %71, %72 : vector<2x32xf32>
    %74 = math.tanh %73 : vector<2x32xf32>
    %75 = arith.mulf %70, %74 : vector<2x32xf32>
    %c4 = arith.constant 4 : index
    %c0_22 = arith.constant 0 : index
    %76 = vector.load %arg6[%c4, %c0_22] : memref<16x32xf32, #tpu.memory_space<vmem>>, vector<2x32xf32>
    tpu.vector_store %arg6[%c4, %c0_22], %75 {strides = array<i32>} : memref<16x32xf32, #tpu.memory_space<vmem>>, vector<2x32xf32>,
    %c4_23 = arith.constant 4 : index
    %c0_24 = arith.constant 0 : index
    %77 = vector.load %arg7[%c4_23, %c0_24] : memref<16x32xf32, #tpu.memory_space<vmem>>, vector<2x32xf32>
    tpu.vector_store %arg7[%c4_23, %c0_24], %73 {strides = array<i32>} : memref<16x32xf32, #tpu.memory_space<vmem>>, vector<2x32xf32>,
    %78 = vector.extract_strided_slice %5 {offsets = [6, 0], sizes = [2, 128], strides = [1, 1]} : vector<16x128xf32> to vector<2x128xf32>
    %cst_25 = arith.constant dense<0.000000e+00> : vector<2x128xf32>
    %79 = tpu.matmul %75, %6, %cst_25 {dimension_numbers = #tpu.dot_dimension_numbers<[1], [0], [0], [1], [0, 0, 1, 1], [], []>} : vector<2x32xf32>, vector<32x128xf32>, vector<2x128xf32> -> vector<2x128xf32>
    %80 = arith.addf %78, %79 : vector<2x128xf32>
    %81 = math.tanh %80 : vector<2x128xf32>
    %82 = arith.negf %80 : vector<2x128xf32>
    %83 = math.exp %82 : vector<2x128xf32>
    %cst_26 = arith.constant 1.000000e+00 : f32
    %84 = vector.broadcast %cst_26 : f32 to vector<2x128xf32>
    %85 = arith.addf %84, %83 : vector<2x128xf32>
    %86 = arith.divf %84, %85 : vector<2x128xf32>
    %87 = arith.select %12, %81, %86 : vector<2x128xi1>, vector<2x128xf32>
    %88 = vector.extract_strided_slice %87 {offsets = [0, 0], sizes = [2, 32], strides = [1, 1]} : vector<2x128xf32> to vector<2x32xf32>
    %89 = vector.extract_strided_slice %87 {offsets = [0, 32], sizes = [2, 32], strides = [1, 1]} : vector<2x128xf32> to vector<2x32xf32>
    %90 = vector.extract_strided_slice %87 {offsets = [0, 64], sizes = [2, 32], strides = [1, 1]} : vector<2x128xf32> to vector<2x32xf32>
    %91 = vector.extract_strided_slice %87 {offsets = [0, 96], sizes = [2, 32], strides = [1, 1]} : vector<2x128xf32> to vector<2x32xf32>
    %92 = arith.mulf %89, %73 : vector<2x32xf32>
    %93 = arith.mulf %88, %90 : vector<2x32xf32>
    %94 = arith.addf %92, %93 : vector<2x32xf32>
    %95 = math.tanh %94 : vector<2x32xf32>
    %96 = arith.mulf %91, %95 : vector<2x32xf32>
    %c6 = arith.constant 6 : index
    %c0_27 = arith.constant 0 : index
    %97 = vector.load %arg6[%c6, %c0_27] : memref<16x32xf32, #tpu.memory_space<vmem>>, vector<2x32xf32>
    tpu.vector_store %arg6[%c6, %c0_27], %96 {strides = array<i32>} : memref<16x32xf32, #tpu.memory_space<vmem>>, vector<2x32xf32>,
    %c6_28 = arith.constant 6 : index
    %c0_29 = arith.constant 0 : index
    %98 = vector.load %arg7[%c6_28, %c0_29] : memref<16x32xf32, #tpu.memory_space<vmem>>, vector<2x32xf32>
    tpu.vector_store %arg7[%c6_28, %c0_29], %94 {strides = array<i32>} : memref<16x32xf32, #tpu.memory_space<vmem>>, vector<2x32xf32>,
    %99 = vector.extract_strided_slice %5 {offsets = [8, 0], sizes = [2, 128], strides = [1, 1]} : vector<16x128xf32> to vector<2x128xf32>
    %cst_30 = arith.constant dense<0.000000e+00> : vector<2x128xf32>
    %100 = tpu.matmul %96, %6, %cst_30 {dimension_numbers = #tpu.dot_dimension_numbers<[1], [0], [0], [1], [0, 0, 1, 1], [], []>} : vector<2x32xf32>, vector<32x128xf32>, vector<2x128xf32> -> vector<2x128xf32>
    %101 = arith.addf %99, %100 : vector<2x128xf32>
    %102 = math.tanh %101 : vector<2x128xf32>
    %103 = arith.negf %101 : vector<2x128xf32>
    %104 = math.exp %103 : vector<2x128xf32>
    %cst_31 = arith.constant 1.000000e+00 : f32
    %105 = vector.broadcast %cst_31 : f32 to vector<2x128xf32>
    %106 = arith.addf %105, %104 : vector<2x128xf32>
    %107 = arith.divf %105, %106 : vector<2x128xf32>
    %108 = arith.select %12, %102, %107 : vector<2x128xi1>, vector<2x128xf32>
    %109 = vector.extract_strided_slice %108 {offsets = [0, 0], sizes = [2, 32], strides = [1, 1]} : vector<2x128xf32> to vector<2x32xf32>
    %110 = vector.extract_strided_slice %108 {offsets = [0, 32], sizes = [2, 32], strides = [1, 1]} : vector<2x128xf32> to vector<2x32xf32>
    %111 = vector.extract_strided_slice %108 {offsets = [0, 64], sizes = [2, 32], strides = [1, 1]} : vector<2x128xf32> to vector<2x32xf32>
    %112 = vector.extract_strided_slice %108 {offsets = [0, 96], sizes = [2, 32], strides = [1, 1]} : vector<2x128xf32> to vector<2x32xf32>
    %113 = arith.mulf %110, %94 : vector<2x32xf32>
    %114 = arith.mulf %109, %111 : vector<2x32xf32>
    %115 = arith.addf %113, %114 : vector<2x32xf32>
    %116 = math.tanh %115 : vector<2x32xf32>
    %117 = arith.mulf %112, %116 : vector<2x32xf32>
    %c8 = arith.constant 8 : index
    %c0_32 = arith.constant 0 : index
    %118 = vector.load %arg6[%c8, %c0_32] : memref<16x32xf32, #tpu.memory_space<vmem>>, vector<2x32xf32>
    tpu.vector_store %arg6[%c8, %c0_32], %117 {strides = array<i32>} : memref<16x32xf32, #tpu.memory_space<vmem>>, vector<2x32xf32>,
    %c8_33 = arith.constant 8 : index
    %c0_34 = arith.constant 0 : index
    %119 = vector.load %arg7[%c8_33, %c0_34] : memref<16x32xf32, #tpu.memory_space<vmem>>, vector<2x32xf32>
    tpu.vector_store %arg7[%c8_33, %c0_34], %115 {strides = array<i32>} : memref<16x32xf32, #tpu.memory_space<vmem>>, vector<2x32xf32>,
    %120 = vector.extract_strided_slice %5 {offsets = [10, 0], sizes = [2, 128], strides = [1, 1]} : vector<16x128xf32> to vector<2x128xf32>
    %cst_35 = arith.constant dense<0.000000e+00> : vector<2x128xf32>
    %121 = tpu.matmul %117, %6, %cst_35 {dimension_numbers = #tpu.dot_dimension_numbers<[1], [0], [0], [1], [0, 0, 1, 1], [], []>} : vector<2x32xf32>, vector<32x128xf32>, vector<2x128xf32> -> vector<2x128xf32>
    %122 = arith.addf %120, %121 : vector<2x128xf32>
    %123 = math.tanh %122 : vector<2x128xf32>
    %124 = arith.negf %122 : vector<2x128xf32>
    %125 = math.exp %124 : vector<2x128xf32>
    %cst_36 = arith.constant 1.000000e+00 : f32
    %126 = vector.broadcast %cst_36 : f32 to vector<2x128xf32>
    %127 = arith.addf %126, %125 : vector<2x128xf32>
    %128 = arith.divf %126, %127 : vector<2x128xf32>
    %129 = arith.select %12, %123, %128 : vector<2x128xi1>, vector<2x128xf32>
    %130 = vector.extract_strided_slice %129 {offsets = [0, 0], sizes = [2, 32], strides = [1, 1]} : vector<2x128xf32> to vector<2x32xf32>
    %131 = vector.extract_strided_slice %129 {offsets = [0, 32], sizes = [2, 32], strides = [1, 1]} : vector<2x128xf32> to vector<2x32xf32>
    %132 = vector.extract_strided_slice %129 {offsets = [0, 64], sizes = [2, 32], strides = [1, 1]} : vector<2x128xf32> to vector<2x32xf32>
    %133 = vector.extract_strided_slice %129 {offsets = [0, 96], sizes = [2, 32], strides = [1, 1]} : vector<2x128xf32> to vector<2x32xf32>
    %134 = arith.mulf %131, %115 : vector<2x32xf32>
    %135 = arith.mulf %130, %132 : vector<2x32xf32>
    %136 = arith.addf %134, %135 : vector<2x32xf32>
    %137 = math.tanh %136 : vector<2x32xf32>
    %138 = arith.mulf %133, %137 : vector<2x32xf32>
    %c10 = arith.constant 10 : index
    %c0_37 = arith.constant 0 : index
    %139 = vector.load %arg6[%c10, %c0_37] : memref<16x32xf32, #tpu.memory_space<vmem>>, vector<2x32xf32>
    tpu.vector_store %arg6[%c10, %c0_37], %138 {strides = array<i32>} : memref<16x32xf32, #tpu.memory_space<vmem>>, vector<2x32xf32>,
    %c10_38 = arith.constant 10 : index
    %c0_39 = arith.constant 0 : index
    %140 = vector.load %arg7[%c10_38, %c0_39] : memref<16x32xf32, #tpu.memory_space<vmem>>, vector<2x32xf32>
    tpu.vector_store %arg7[%c10_38, %c0_39], %136 {strides = array<i32>} : memref<16x32xf32, #tpu.memory_space<vmem>>, vector<2x32xf32>,
    %141 = vector.extract_strided_slice %5 {offsets = [12, 0], sizes = [2, 128], strides = [1, 1]} : vector<16x128xf32> to vector<2x128xf32>
    %cst_40 = arith.constant dense<0.000000e+00> : vector<2x128xf32>
    %142 = tpu.matmul %138, %6, %cst_40 {dimension_numbers = #tpu.dot_dimension_numbers<[1], [0], [0], [1], [0, 0, 1, 1], [], []>} : vector<2x32xf32>, vector<32x128xf32>, vector<2x128xf32> -> vector<2x128xf32>
    %143 = arith.addf %141, %142 : vector<2x128xf32>
    %144 = math.tanh %143 : vector<2x128xf32>
    %145 = arith.negf %143 : vector<2x128xf32>
    %146 = math.exp %145 : vector<2x128xf32>
    %cst_41 = arith.constant 1.000000e+00 : f32
    %147 = vector.broadcast %cst_41 : f32 to vector<2x128xf32>
    %148 = arith.addf %147, %146 : vector<2x128xf32>
    %149 = arith.divf %147, %148 : vector<2x128xf32>
    %150 = arith.select %12, %144, %149 : vector<2x128xi1>, vector<2x128xf32>
    %151 = vector.extract_strided_slice %150 {offsets = [0, 0], sizes = [2, 32], strides = [1, 1]} : vector<2x128xf32> to vector<2x32xf32>
    %152 = vector.extract_strided_slice %150 {offsets = [0, 32], sizes = [2, 32], strides = [1, 1]} : vector<2x128xf32> to vector<2x32xf32>
    %153 = vector.extract_strided_slice %150 {offsets = [0, 64], sizes = [2, 32], strides = [1, 1]} : vector<2x128xf32> to vector<2x32xf32>
    %154 = vector.extract_strided_slice %150 {offsets = [0, 96], sizes = [2, 32], strides = [1, 1]} : vector<2x128xf32> to vector<2x32xf32>
    %155 = arith.mulf %152, %136 : vector<2x32xf32>
    %156 = arith.mulf %151, %153 : vector<2x32xf32>
    %157 = arith.addf %155, %156 : vector<2x32xf32>
    %158 = math.tanh %157 : vector<2x32xf32>
    %159 = arith.mulf %154, %158 : vector<2x32xf32>
    %c12 = arith.constant 12 : index
    %c0_42 = arith.constant 0 : index
    %160 = vector.load %arg6[%c12, %c0_42] : memref<16x32xf32, #tpu.memory_space<vmem>>, vector<2x32xf32>
    tpu.vector_store %arg6[%c12, %c0_42], %159 {strides = array<i32>} : memref<16x32xf32, #tpu.memory_space<vmem>>, vector<2x32xf32>,
    %c12_43 = arith.constant 12 : index
    %c0_44 = arith.constant 0 : index
    %161 = vector.load %arg7[%c12_43, %c0_44] : memref<16x32xf32, #tpu.memory_space<vmem>>, vector<2x32xf32>
    tpu.vector_store %arg7[%c12_43, %c0_44], %157 {strides = array<i32>} : memref<16x32xf32, #tpu.memory_space<vmem>>, vector<2x32xf32>,
    %162 = vector.extract_strided_slice %5 {offsets = [14, 0], sizes = [2, 128], strides = [1, 1]} : vector<16x128xf32> to vector<2x128xf32>
    %cst_45 = arith.constant dense<0.000000e+00> : vector<2x128xf32>
    %163 = tpu.matmul %159, %6, %cst_45 {dimension_numbers = #tpu.dot_dimension_numbers<[1], [0], [0], [1], [0, 0, 1, 1], [], []>} : vector<2x32xf32>, vector<32x128xf32>, vector<2x128xf32> -> vector<2x128xf32>
    %164 = arith.addf %162, %163 : vector<2x128xf32>
    %165 = math.tanh %164 : vector<2x128xf32>
    %166 = arith.negf %164 : vector<2x128xf32>
    %167 = math.exp %166 : vector<2x128xf32>
    %cst_46 = arith.constant 1.000000e+00 : f32
    %168 = vector.broadcast %cst_46 : f32 to vector<2x128xf32>
    %169 = arith.addf %168, %167 : vector<2x128xf32>
    %170 = arith.divf %168, %169 : vector<2x128xf32>
    %171 = arith.select %12, %165, %170 : vector<2x128xi1>, vector<2x128xf32>
    %172 = vector.extract_strided_slice %171 {offsets = [0, 0], sizes = [2, 32], strides = [1, 1]} : vector<2x128xf32> to vector<2x32xf32>
    %173 = vector.extract_strided_slice %171 {offsets = [0, 32], sizes = [2, 32], strides = [1, 1]} : vector<2x128xf32> to vector<2x32xf32>
    %174 = vector.extract_strided_slice %171 {offsets = [0, 64], sizes = [2, 32], strides = [1, 1]} : vector<2x128xf32> to vector<2x32xf32>
    %175 = vector.extract_strided_slice %171 {offsets = [0, 96], sizes = [2, 32], strides = [1, 1]} : vector<2x128xf32> to vector<2x32xf32>
    %176 = arith.mulf %173, %157 : vector<2x32xf32>
    %177 = arith.mulf %172, %174 : vector<2x32xf32>
    %178 = arith.addf %176, %177 : vector<2x32xf32>
    %179 = math.tanh %178 : vector<2x32xf32>
    %180 = arith.mulf %175, %179 : vector<2x32xf32>
    %c14 = arith.constant 14 : index
    %c0_47 = arith.constant 0 : index
    %181 = vector.load %arg6[%c14, %c0_47] : memref<16x32xf32, #tpu.memory_space<vmem>>, vector<2x32xf32>
    tpu.vector_store %arg6[%c14, %c0_47], %180 {strides = array<i32>} : memref<16x32xf32, #tpu.memory_space<vmem>>, vector<2x32xf32>,
    %c14_48 = arith.constant 14 : index
    %c0_49 = arith.constant 0 : index
    %182 = vector.load %arg7[%c14_48, %c0_49] : memref<16x32xf32, #tpu.memory_space<vmem>>, vector<2x32xf32>
    tpu.vector_store %arg7[%c14_48, %c0_49], %178 {strides = array<i32>} : memref<16x32xf32, #tpu.memory_space<vmem>>, vector<2x32xf32>,
    %c0_50 = arith.constant 0 : index
    %c0_51 = arith.constant 0 : index
    %183 = vector.load %arg4[%c0_50, %c0_51] : memref<32x128xf32, #tpu.memory_space<vmem>>, vector<32x128xf32>
    %cst_52 = arith.constant dense<0.000000e+00> : vector<16x128xf32>
    %184 = tpu.matmul %0, %183, %cst_52 {dimension_numbers = #tpu.dot_dimension_numbers<[1], [0], [0], [1], [0, 0, 1, 1], [], []>} : vector<16x32xf32>, vector<32x128xf32>, vector<16x128xf32> -> vector<16x128xf32>
    %cst_53 = arith.constant 0.000000e+00 : f32
    %185 = vector.broadcast %cst_53 : f32 to vector<16x128xf32>
    %186 = arith.maximumf %184, %185 : vector<16x128xf32>
    %c0_54 = arith.constant 0 : index
    %c0_55 = arith.constant 0 : index
    %187 = vector.load %arg5[%c0_54, %c0_55] : memref<1x128xf32, #tpu.memory_space<vmem>>, vector<1x128xf32>
    %cst_56 = arith.constant dense<0.000000e+00> : vector<1x16xf32>
    %188 = tpu.matmul %187, %186, %cst_56 {dimension_numbers = #tpu.dot_dimension_numbers<[1], [1], [0], [0], [0, 0, 1, 0], [], []>} : vector<1x128xf32>, vector<16x128xf32>, vector<1x16xf32> -> vector<1x16xf32>
    %c0_57 = arith.constant 0 : index
    %c0_58 = arith.constant 0 : index
    %189 = vector.load %arg8[%c0_57, %c0_58] : memref<1x16xf32, #tpu.memory_space<vmem>>, vector<1x16xf32>
    tpu.vector_store %arg8[%c0_57, %c0_58], %188 {strides = array<i32>} : memref<1x16xf32, #tpu.memory_space<vmem>>, vector<1x16xf32>,
    return
  }
}

</mosaic_0001>

<bundles_post_ra>
// kernel: tpu_custom_call.1
= control target key start
LH: loop header
LB: loop body
LE: loop exit
PB: predicated region body
PF: predicated region fallthrough
CT: control target
= control target key end

     0   :  { %14 = vsyncpa [#allocation3], 0  ;;  %s2203_s0 = inlined_call_operand.hbm [shape: f32[16,32], index: 0, kind: input, shape index: {}]   ;;  %s2204_s1 = inlined_call_operand.hbm [shape: f32[32,128], index: 1, kind: input, shape index: {}]   ;;  %s2205_s2 = inlined_call_operand.hbm [shape: f32[32,128], index: 2, kind: input, shape index: {}]   ;;  %s2206_s3 = inlined_call_operand.vmem [shape: f32[1,128], index: 3, kind: input, shape index: {}]   ;;  %s2207_s4 = inlined_call_operand.hbm [shape: f32[32,128], index: 4, kind: input, shape index: {}]   ;;  %s2208_s5 = inlined_call_operand.vmem [shape: f32[1,128], index: 5, kind: input, shape index: {}]   ;;  %s2209_s6 = inlined_call_operand.hbm [shape: f32[16,32], index: 6, kind: output, shape index: {0}]   ;;  %s2210_s7 = inlined_call_operand.hbm [shape: f32[16,32], index: 7, kind: output, shape index: {1}]   ;;  %s2211_s8 = inlined_call_operand.hbm [shape: f32[1,16], index: 8, kind: output, shape index: {2}]  }
   0x1   :  { %15 = vsyncpa [#allocation6], 0 }
   0x2   :  { %16 = vsyncpa [#allocation9], 0 }
   0x3   :  { %17 = vsyncpa [#allocation4], 0 }
   0x4   :  { %18 = vsyncpa [#allocation12], 0  ;;  %s1807_s27 = smov [#allocation5]   ;;  %s1808_s29 = smov [#allocation2]  }
   0x5   :  { %s36_s28 = sshll.u32 %s1807_s27, 4  ;;  %s24_s30 = sshll.u32 %s1808_s29, 4  ;;  %s37_s28 = int_to_ptr.vmem [resolvable:$true] %s36_s28  ;;  %s1867_s30 = int_to_ptr.vmem [resolvable:$true] %s24_s30 }
   0x6   :  { %s1643_s11 = scalar_lea.hbm %s2204_s1, 512 }
   0x7   :  { %p1644_p0 = scmp.ne.s32.totalorder %s2204_s1, %s1643_s11  ;;  %p1647_p1 = scmp.lt.u32.totalorder %s1643_s11, %s2204_s1 }
   0x9   :  { %p1649_p2 = pnand %p1647_p1, %p1644_p0 }
   0xb   :  { %1652 = shalt.err (!%p1649_p2)
}
   0xc   :  { %s1653_s16 = scalar_lea.vmem %s37_s28, 512  ;;  %p1658_p4 = scmp.lt.s32.totalorder %s37_s28, %s37_s28 }
   0xd   :  { %p1654_p3 = scmp.ne.s32.totalorder %s37_s28, %s1653_s16  ;;  %p1659_p5 = scmp.lt.s32.totalorder %s1653_s16, %s1653_s16 }
   0xf   :  { %p1660_p6 = por %p1659_p5, %p1658_p4 }
  0x11   :  { %p1661_p7 = pnand %p1660_p6, %p1654_p3 }
  0x13   :  { %1664 = shalt.err (!%p1661_p7)
}
  0x14   :  { %s1809_s17 = smov 128   ;;  %s1810_s18 = smov 8  }
  0x15   :  { %42 = dma.hbm_to_vmem [thread:$0]  %s2204_s1, 512, %s37_s28, [#allocation6], %s1809_s17, %s1809_s17, %s1810_s18  }
  0x16   :  { %s1665_s23 = scalar_lea.hbm %s2203_s0, 256 }
  0x17   :  { %p1666_p8 = scmp.ne.s32.totalorder %s2203_s0, %s1665_s23  ;;  %p1669_p9 = scmp.lt.u32.totalorder %s1665_s23, %s2203_s0 }
  0x19   :  { %p1671_p10 = pnand %p1669_p9, %p1666_p8 }
  0x1b   :  { %1674 = shalt.err (!%p1671_p10)
}
  0x1c   :  { %s1675_s29 = scalar_lea.vmem %s1867_s30, 256  ;;  %p1680_p12 = scmp.lt.s32.totalorder %s1867_s30, %s1867_s30 }
  0x1d   :  { %p1676_p11 = scmp.ne.s32.totalorder %s1867_s30, %s1675_s29  ;;  %p1681_p13 = scmp.lt.s32.totalorder %s1675_s29, %s1675_s29 }
  0x1f   :  { %p1682_p0 = por %p1681_p13, %p1680_p12 }
  0x21   :  { %p1683_p1 = pnand %p1682_p0, %p1676_p11 }
  0x23   :  { %1686 = shalt.err (!%p1683_p1)
}
  0x24   :  { %30 = dma.hbm_to_vmem [thread:$0]  %s2203_s0, 256, %s1867_s30, [#allocation3], %s1809_s17, %s1809_s17, %s1810_s18  }
  0x25   :  { %s1811_s9 = smov [#allocation7]   ;;  %s1812_s11 = smov [#allocation8]  }
  0x26   :  { %s48_s10 = sshll.u32 %s1811_s9, 4  ;;  %s62_s12 = sshll.u32 %s1812_s11, 4  ;;  %s49_s10 = int_to_ptr.vmem [resolvable:$true] %s48_s10  ;;  %s1904_s12 = int_to_ptr.vmem [resolvable:$true] %s62_s12 }
  0x27   :  { %s1687_s15 = scalar_lea.hbm %s2205_s2, 512 }
  0x28   :  { %p1688_p2 = scmp.ne.s32.totalorder %s2205_s2, %s1687_s15  ;;  %p1691_p3 = scmp.lt.u32.totalorder %s1687_s15, %s2205_s2 }
  0x2a   :  { %p1693_p4 = pnand %p1691_p3, %p1688_p2 }
  0x2c   :  { %1696 = shalt.err (!%p1693_p4)
}
  0x2d   :  { %s1697_s0 = scalar_lea.vmem %s49_s10, 512  ;;  %p1702_p6 = scmp.lt.s32.totalorder %s49_s10, %s49_s10 }
  0x2e   :  { %p1698_p5 = scmp.ne.s32.totalorder %s49_s10, %s1697_s0  ;;  %p1703_p7 = scmp.lt.s32.totalorder %s1697_s0, %s1697_s0 }
  0x30   :  { %p1704_p8 = por %p1703_p7, %p1702_p6 }
  0x32   :  { %p1705_p9 = pnand %p1704_p8, %p1698_p5 }
  0x34   :  { %1708 = shalt.err (!%p1705_p9)
}
  0x35   :  { %54 = dma.hbm_to_vmem [thread:$0]  %s2205_s2, 512, %s49_s10, [#allocation6], %s1809_s17, %s1809_s17, %s1810_s18  }
  0x36   :  { %s1709_s25 = scalar_lea.hbm %s2207_s4, 512 }
  0x37   :  { %p1710_p10 = scmp.ne.s32.totalorder %s2207_s4, %s1709_s25  ;;  %p1713_p11 = scmp.lt.u32.totalorder %s1709_s25, %s2207_s4 }
  0x39   :  { %p1715_p12 = pnand %p1713_p11, %p1710_p10 }
  0x3b   :  { %1718 = shalt.err (!%p1715_p12)
}
  0x3c   :  { %s1719_s28 = scalar_lea.vmem %s1904_s12, 512  ;;  %p1724_p0 = scmp.lt.s32.totalorder %s1904_s12, %s1904_s12 }
  0x3d   :  { %p1720_p13 = scmp.ne.s32.totalorder %s1904_s12, %s1719_s28  ;;  %p1725_p1 = scmp.lt.s32.totalorder %s1719_s28, %s1719_s28 }
  0x3f   :  { %p1726_p2 = por %p1725_p1, %p1724_p0 }
  0x41   :  { %p1727_p3 = pnand %p1726_p2, %p1720_p13 }
  0x43   :  { %1730 = shalt.err (!%p1727_p3)
}
  0x44   :  { %68 = dma.hbm_to_vmem [thread:$0]  %s2207_s4, 512, %s1904_s12, [#allocation9], %s1809_s17, %s1809_s17, %s1810_s18  }
  0x45   :  { %1797 = dma.done.wait [#allocation3], 256  }
  0x46   :  { %1798 = vsyncadd [#allocation3], 4294967040 }
  0x47   :  { %1799 = dma.done.wait [#allocation6], 1024  }
  0x48   :  { %1800 = vsyncadd [#allocation6], 4294966272 }
  0x49   :  { %1801 = dma.done.wait [#allocation9], 512  }
  0x4a   :  { %1802 = vsyncadd [#allocation9], 4294966784  ;;  %v1813_v0 = vmov 0.0|0.0   ;;  %vm1814_vm0 = vmmov 0   ;;  %v1815_v1 = vmov 0.0   ;;  %v85_v2 = vld [vmem:[#allocation5] sm:$0xff]  ;;  %v182_v26 = vlaneseq }
  0x4b   :  { %1505 = vmatprep.subr.bf16.mxu1 %v1813_v0  ;;  %1399 = vmatprep.mubr.msk.f32.mxu1 %vm1814_vm0, %v1815_v1  ;;  %v86_v3 = vld [vmem:[#allocation5 + $0x8] sm:$0xff]  ;;  %v178_v4 = vld [vmem:[#allocation7] sm:$0xff]  ;;  %vm96_vm1 = vcmask 261120   ;;  %v87_v7 = vld [vmem:[#allocation5 + $0x10] sm:$0xff]  ;;  %s1817_s11 = smov 32   ;;  %vm290_vm5 = vcmask 254976  }
  0x4c   :  { %v1497_v5 = vpack.c.bf16 %v86_v3, %v85_v2  ;;  %v179_v6 = vld [vmem:[#allocation7 + $0x8] sm:$0xff]  ;;  %v88_v8 = vld [vmem:[#allocation5 + $0x18] sm:$0xff]  ;;  %v1946_v11 = vld [vmem:[#allocation2] sm:$0xff]  ;;  %v183_v28 = vand.u32 127, %v182_v26  ;;  %s1818_s12 = smov 96   ;;  %vm521_vm6 = vcmask 259076  }
  0x4d   :  { %v1944_v9 = vpack.c.bf16 %v179_v6, %v178_v4  ;;  %v1501_v10 = vpack.c.bf16 %v88_v8, %v87_v7  ;;  %v180_v12 = vld [vmem:[#allocation7 + $0x10] sm:$0xff]  ;;  %v181_v13 = vld [vmem:[#allocation7 + $0x18] sm:$0xff]  ;;  %1388 = vmatprep.mubr.msk.f32.mxu0 %vm96_vm1, %v1946_v11  ;;  %vm404_vm7 = vcmask 257026   ;;  %vm638_vm8 = vcmask 261126   ;;  %s1820_s16 = smov [#allocation13]  }
  0x4e   :  { %1498 = vmatprep.subr.bf16.mxu0 %v1497_v5  ;;  %v1951_v14 = vpack.c.bf16 %v181_v13, %v180_v12  ;;  %v1955_v15 = vld [vmem:[#allocation2 + $0x8] sm:$0xff]  ;;  %v1305_v16 = vld [vmem:[%s2206_s3] ss:$0 sm:$0xff]  ;;  %vm184_vm2 = vcmp.ge.s32.totalorder %v183_v28, 64  ;;  %vm185_vm3 = vcmp.lt.s32.totalorder %v183_v28, 96  ;;  %s1816_s3 = smov 64  }
  0x4f   :  { %1500 = vmatpush3.bf16.msra.mxu0 %v1497_v5  ;;  %1507 = vmatpush3.bf16.msra.mxu1 %v1944_v9  ;;  %vm1982_vm4 = vmand %vm184_vm2, %vm185_vm3  ;;  %v1184_v29 = vld [vmem:[%s2208_s5] sm:$0x1]  ;;  %vm1255_vm9 = vcmask 122880   ;;  %s1819_s5 = smov [#allocation11]   ;;  %s1287_s19 = sshll.u32 %s1820_s16, 4  ;;  %s1288_s19 = int_to_ptr.vmem [resolvable:$true] %s1287_s19 }
  0x50   :  { %1502 = vmatprep.subr.bf16.mxu0 %v1501_v10  ;;  %1508 = vmatprep.subr.bf16.mxu1 %v1813_v0  ;;  %s1274_s15 = sshll.u32 %s1819_s5, 4  ;;  %s1275_s15 = int_to_ptr.vmem [resolvable:$true] %s1274_s15 }
  0x51   :  { %s1731_s20 = scalar_lea.vmem %s1275_s15, 256  ;;  %p1736_p5 = scmp.lt.s32.totalorder %s1275_s15, %s1275_s15 }
  0x52   :  { %p1732_p4 = scmp.ne.s32.totalorder %s1275_s15, %s1731_s20  ;;  %p1737_p6 = scmp.lt.s32.totalorder %s1731_s20, %s1731_s20 }
  0x53   :  { %1504 = vmatpush3.bf16.msra.mxu0 %v1501_v10  ;;  %1510 = vmatpush3.bf16.msra.mxu1 %v1951_v14 }
  0x54   :  { %1511 = vmatprep.subr.bf16.mxu0 %v1813_v0  ;;  %1517 = vmatprep.subr.bf16.mxu1 %v1813_v0  ;;  %p1738_p7 = por %p1737_p6, %p1736_p5 }
  0x56   :  { %1389 = vmatmul.mubr.msk.f32.vlgmr.msra.gmra.mrb[0].mxu0 %vm96_vm1, %v1955_v15  ;;  %1400 = vmatmul.mubr.f32.vlgmr.msra.gmra.mrb[0].mxu1 %v1815_v1  ;;  %p1739_p8 = pnand %p1738_p7, %p1732_p4 }
  0x57   :  { %1513 = vmatpush3.bf16.msra.mxu0 %v1944_v9  ;;  %1410 = vmatprep.mubr.msk.f32.mxu0 %vm1814_vm0, %v1815_v1 }
  0x58   :  { %1514 = vmatprep.subr.bf16.mxu0 %v1813_v0  ;;  %1519 = vmatpush3.bf16.msra.mxu1 %v1944_v9 }
  0x59   :  { %1520 = vmatprep.subr.bf16.mxu1 %v1813_v0  ;;  %1421 = vmatprep.mubr.msk.f32.mxu1 %vm1814_vm0, %v1815_v1 }
  0x5b   :  { %1516 = vmatpush3.bf16.msra.mxu0 %v1951_v14 }
  0x5c   :  { %1522 = vmatpush3.bf16.msra.mxu1 %v1951_v14  ;;  %1523 = vmatprep.subr.bf16.mxu0 %v1813_v0 }
  0x5d   :  { %1529 = vmatprep.subr.bf16.mxu1 %v1813_v0 }
 0x129   :  { %v1390_v17 = vpop.f32.mrb[0].mxu0  ;;  %v256_v18 = vpop.f32.mrb[0].mxu1 }
 0x12a   :  { %v1977_v19 = vadd.f32 %v1390_v17, %v1305_v16  ;;  %v169_v20 = vpop.f32.mrb[1].mxu0  ;;  %v1401_v21 = vpop.f32.mrb[1].mxu1 }
 0x12b   :  { %v1979_v22 = vadd.f32 %v1305_v16, %v169_v20 }
 0x12d   :  { %v260_v23 = vadd.f32 %v256_v18, %v1979_v22 }
 0x12f   :  { %v1308_v24 = vmul.f32 -1.442695, %v260_v23 }
 0x131   :  { %1579 = vpow2.f32 %v1308_v24 }
 0x132   :  { %1581 = vtanh.f32 %v260_v23 }
 0x13b   :  { %v1580_v25 = vpop.eup %1579 }
 0x13c   :  { %v265_v27 = vadd.f32 1.0, %v1580_v25  ;;  %v1582_v30 = vpop.eup %1581 }
 0x13e   :  { %1583 = vrcp.f32 %v265_v27 }
 0x148   :  { %v1584_v31 = vpop.eup %1583 }
 0x149   :  { %v268_v32 = vsel %vm1982_vm4, %v1582_v30, %v1584_v31 }
 0x14a   :  { %271 = vrot.lane.b32.xlu0 %v268_v32, %s1816_s3  ;;  %v269_v35 = vmul.f32 0.0, %v268_v32 }
 0x1bc   :  { %v272_v33 = vpop.permute.xlu0 %271 }
 0x1bd   :  { %v274_v34 = vmul.f32 %v272_v33, %v268_v32 }
 0x1bf   :  { %276 = vrot.lane.b32.xlu0 %v274_v34, %s1817_s11 }
 0x231   :  { %v277_v36 = vpop.permute.xlu0 %276 }
 0x232   :  { %v1990_v37 = vadd.f32 %v277_v36, %v269_v35 }
 0x234   :  { %1585 = vtanh.f32 %v1990_v37  ;;  %v381_v54 = vrot.slane %v1990_v37, 6 }
 0x23e   :  { %v1586_v38 = vpop.eup %1585 }
 0x23f   :  { %282 = vrot.lane.b32.xlu1 %v1586_v38, %s1816_s3 }
 0x2b1   :  { %v283_v39 = vpop.permute.xlu1 %282 }
 0x2b2   :  { %v285_v40 = vmul.f32 %v283_v39, %v268_v32 }
 0x2b4   :  { %287 = vrot.lane.b32.xlu1 %v285_v40, %s1817_s11 }
 0x326   :  { %v288_v41 = vpop.permute.xlu1 %287 }
 0x327   :  { %291 = vst.msk [vmem:[#allocation10] sm:$0x3] %vm290_vm5, %v288_v41  ;;  %1411 = vmatmul.mubr.msk.f32.vlgmr.msra.gmra.mrb[2].mxu0 %vm96_vm1, %v288_v41 }
 0x328   :  { %1525 = vmatpush3.bf16.msra.mxu0 %v1944_v9  ;;  %1432 = vmatprep.mubr.msk.f32.mxu0 %vm1814_vm0, %v1815_v1 }
 0x329   :  { %1526 = vmatprep.subr.bf16.mxu0 %v1813_v0 }
 0x32c   :  { %1528 = vmatpush3.bf16.msra.mxu0 %v1951_v14 }
 0x32d   :  { %1535 = vmatprep.subr.bf16.mxu0 %v1813_v0 }
 0x3fa   :  { %v365_v42 = vpop.f32.mrb[2].mxu0 }
 0x3fb   :  { %v370_v43 = vrot.slane %v365_v42, 6  ;;  %v1412_v44 = vpop.f32.mrb[3].mxu0 }
 0x3fd   :  { %v372_v45 = vadd.f32 %v370_v43, %v1979_v22 }
 0x3ff   :  { %v1310_v46 = vmul.f32 -1.442695, %v372_v45 }
 0x401   :  { %1587 = vpow2.f32 %v1310_v46 }
 0x402   :  { %1589 = vtanh.f32 %v372_v45 }
 0x40b   :  { %v1588_v47 = vpop.eup %1587 }
 0x40c   :  { %v377_v48 = vadd.f32 1.0, %v1588_v47  ;;  %v1590_v49 = vpop.eup %1589 }
 0x40e   :  { %1591 = vrcp.f32 %v377_v48 }
 0x418   :  { %v1592_v50 = vpop.eup %1591 }
 0x419   :  { %v380_v51 = vsel %vm1982_vm4, %v1590_v49, %v1592_v50 }
 0x41a   :  { %385 = vrot.lane.b32.xlu0 %v380_v51, %s1816_s3  ;;  %v383_v55 = vmul.f32 %v381_v54, %v380_v51 }
 0x48c   :  { %v386_v52 = vpop.permute.xlu0 %385 }
 0x48d   :  { %v388_v53 = vmul.f32 %v386_v52, %v380_v51 }
 0x48f   :  { %390 = vrot.lane.b32.xlu1 %v388_v53, %s1817_s11 }
 0x501   :  { %v391_v56 = vpop.permute.xlu1 %390 }
 0x502   :  { %v2009_v57 = vadd.f32 %v391_v56, %v383_v55 }
 0x504   :  { %1593 = vtanh.f32 %v2009_v57  ;;  %v498_v17 = vrot.slane %v2009_v57, 6 }
 0x50e   :  { %v1594_v58 = vpop.eup %1593 }
 0x50f   :  { %396 = vrot.lane.b32.xlu0 %v1594_v58, %s1816_s3 }
 0x581   :  { %v397_v59 = vpop.permute.xlu0 %396 }
 0x582   :  { %v2013_v60 = vmul.f32 %v397_v59, %v380_v51 }
 0x584   :  { %v411_v61 = vrot.slane %v2013_v60, 2 }
 0x586   :  { %412 = vrot.lane.b32.xlu1 %v411_v61, %s1817_s11 }
 0x5f8   :  { %v413_v62 = vpop.permute.xlu1 %412 }
 0x5f9   :  { %1422 = vmatmul.mubr.msk.f32.vlgmr.msra.gmra.mrb[2].mxu1 %vm96_vm1, %v413_v62 }
 0x5fa   :  { %1531 = vmatpush3.bf16.msra.mxu1 %v1944_v9  ;;  %1443 = vmatprep.mubr.msk.f32.mxu1 %vm1814_vm0, %v1815_v1 }
 0x5fb   :  { %1532 = vmatprep.subr.bf16.mxu1 %v1813_v0 }
 0x5fe   :  { %1534 = vmatpush3.bf16.msra.mxu1 %v1951_v14 }
 0x5ff   :  { %1541 = vmatprep.subr.bf16.mxu1 %v1813_v0 }
 0x6cc   :  { %v482_v63 = vpop.f32.mrb[2].mxu1 }
 0x6cd   :  { %v487_v2 = vrot.slane %v482_v63, 4  ;;  %v1423_v3 = vpop.f32.mrb[3].mxu1 }
 0x6cf   :  { %v489_v4 = vadd.f32 %v487_v2, %v1979_v22 }
 0x6d1   :  { %v1312_v5 = vmul.f32 -1.442695, %v489_v4 }
 0x6d3   :  { %1595 = vpow2.f32 %v1312_v5 }
 0x6d4   :  { %1597 = vtanh.f32 %v489_v4 }
 0x6dd   :  { %v1596_v6 = vpop.eup %1595 }
 0x6de   :  { %v494_v7 = vadd.f32 1.0, %v1596_v6  ;;  %v1598_v8 = vpop.eup %1597 }
 0x6e0   :  { %1599 = vrcp.f32 %v494_v7 }
 0x6ea   :  { %v1600_v10 = vpop.eup %1599 }
 0x6eb   :  { %v497_v12 = vsel %vm1982_vm4, %v1598_v8, %v1600_v10 }
 0x6ec   :  { %502 = vrot.lane.b32.xlu0 %v497_v12, %s1816_s3  ;;  %v500_v18 = vmul.f32 %v498_v17, %v497_v12 }
 0x75e   :  { %v503_v13 = vpop.permute.xlu0 %502 }
 0x75f   :  { %v505_v16 = vmul.f32 %v503_v13, %v497_v12 }
 0x761   :  { %507 = vrot.lane.b32.xlu1 %v505_v16, %s1817_s11 }
 0x7d3   :  { %v508_v20 = vpop.permute.xlu1 %507 }
 0x7d4   :  { %v2030_v21 = vadd.f32 %v508_v20, %v500_v18 }
 0x7d6   :  { %1601 = vtanh.f32 %v2030_v21  ;;  %v615_v42 = vrot.slane %v2030_v21, 6 }
 0x7e0   :  { %v1602_v23 = vpop.eup %1601 }
 0x7e1   :  { %513 = vrot.lane.b32.xlu0 %v1602_v23, %s1816_s3 }
 0x853   :  { %v514_v24 = vpop.permute.xlu0 %513 }
 0x854   :  { %v2034_v25 = vmul.f32 %v514_v24, %v497_v12 }
 0x856   :  { %v528_v26 = vrot.slane %v2034_v25, 4 }
 0x858   :  { %529 = vrot.lane.b32.xlu1 %v528_v26, %s1817_s11 }
 0x8ca   :  { %v530_v27 = vpop.permute.xlu1 %529 }
 0x8cb   :  { %1433 = vmatmul.mubr.msk.f32.vlgmr.msra.gmra.mrb[4].mxu0 %vm96_vm1, %v530_v27 }
 0x8cc   :  { %1537 = vmatpush3.bf16.msra.mxu0 %v1944_v9  ;;  %1454 = vmatprep.mubr.msk.f32.mxu0 %vm1814_vm0, %v1815_v1 }
 0x8cd   :  { %1538 = vmatprep.subr.bf16.mxu0 %v1813_v0 }
 0x8d0   :  { %1540 = vmatpush3.bf16.msra.mxu0 %v1951_v14 }
 0x8d1   :  { %1547 = vmatprep.subr.bf16.mxu0 %v1813_v0 }
 0x99e   :  { %v599_v28 = vpop.f32.mrb[4].mxu0 }
 0x99f   :  { %v604_v30 = vrot.slane %v599_v28, 2  ;;  %v1434_v31 = vpop.f32.mrb[5].mxu0 }
 0x9a1   :  { %v606_v32 = vadd.f32 %v604_v30, %v1979_v22 }
 0x9a3   :  { %v1314_v33 = vmul.f32 -1.442695, %v606_v32 }
 0x9a5   :  { %1603 = vpow2.f32 %v1314_v33 }
 0x9a6   :  { %1605 = vtanh.f32 %v606_v32 }
 0x9af   :  { %v1604_v34 = vpop.eup %1603 }
 0x9b0   :  { %v611_v35 = vadd.f32 1.0, %v1604_v34  ;;  %v1606_v36 = vpop.eup %1605 }
 0x9b2   :  { %1607 = vrcp.f32 %v611_v35 }
 0x9bc   :  { %v1608_v38 = vpop.eup %1607 }
 0x9bd   :  { %v614_v39 = vsel %vm1982_vm4, %v1606_v36, %v1608_v38 }
 0x9be   :  { %619 = vrot.lane.b32.xlu0 %v614_v39, %s1816_s3  ;;  %v617_v22 = vmul.f32 %v615_v42, %v614_v39 }
 0xa30   :  { %v620_v40 = vpop.permute.xlu0 %619 }
 0xa31   :  { %v622_v41 = vmul.f32 %v620_v40, %v614_v39 }
 0xa33   :  { %624 = vrot.lane.b32.xlu1 %v622_v41, %s1817_s11 }
 0xaa5   :  { %v625_v43 = vpop.permute.xlu1 %624 }
 0xaa6   :  { %v2051_v44 = vadd.f32 %v625_v43, %v617_v22 }
 0xaa8   :  { %1609 = vtanh.f32 %v2051_v44  ;;  %v729_v63 = vrot.slane %v2051_v44, 6 }
 0xab2   :  { %v1610_v45 = vpop.eup %1609 }
 0xab3   :  { %630 = vrot.lane.b32.xlu0 %v1610_v45, %s1816_s3 }
 0xb25   :  { %v631_v46 = vpop.permute.xlu0 %630 }
 0xb26   :  { %v2055_v47 = vmul.f32 %v631_v46, %v614_v39 }
 0xb28   :  { %v645_v48 = vrot.slane %v2055_v47, 6 }
 0xb2a   :  { %646 = vrot.lane.b32.xlu1 %v645_v48, %s1817_s11 }
 0xb9c   :  { %v647_v49 = vpop.permute.xlu1 %646 }
 0xb9d   :  { %1444 = vmatmul.mubr.msk.f32.vlgmr.msra.gmra.mrb[4].mxu1 %vm96_vm1, %v647_v49 }
 0xb9e   :  { %1543 = vmatpush3.bf16.msra.mxu1 %v1944_v9  ;;  %1465 = vmatprep.mubr.msk.f32.mxu1 %vm1814_vm0, %v1815_v1 }
 0xb9f   :  { %1544 = vmatprep.subr.bf16.mxu1 %v1813_v0 }
 0xba2   :  { %1546 = vmatpush3.bf16.msra.mxu1 %v1951_v14 }
 0xc70   :  { %v716_v50 = vpop.f32.mrb[4].mxu1 }
 0xc71   :  { %v720_v51 = vadd.f32 %v716_v50, %v1977_v19  ;;  %v1445_v52 = vpop.f32.mrb[5].mxu1 }
 0xc73   :  { %v1316_v53 = vmul.f32 -1.442695, %v720_v51 }
 0xc75   :  { %1611 = vpow2.f32 %v1316_v53 }
 0xc76   :  { %1613 = vtanh.f32 %v720_v51 }
 0xc7f   :  { %v1612_v54 = vpop.eup %1611 }
 0xc80   :  { %v725_v55 = vadd.f32 1.0, %v1612_v54  ;;  %v1614_v56 = vpop.eup %1613 }
 0xc82   :  { %1615 = vrcp.f32 %v725_v55 }
 0xc8c   :  { %v1616_v58 = vpop.eup %1615 }
 0xc8d   :  { %v728_v59 = vsel %vm1982_vm4, %v1614_v56, %v1616_v58 }
 0xc8e   :  { %733 = vrot.lane.b32.xlu0 %v728_v59, %s1816_s3  ;;  %v731_v2 = vmul.f32 %v729_v63, %v728_v59 }
 0xd00   :  { %v734_v61 = vpop.permute.xlu0 %733 }
 0xd01   :  { %v736_v62 = vmul.f32 %v734_v61, %v728_v59  ;;  %v1104_v61 = vld [vmem:[#allocation8 + $0x8] sm:$0xff] }
 0xd03   :  { %738 = vrot.lane.b32.xlu1 %v736_v62, %s1817_s11  ;;  %v1105_v62 = vld [vmem:[#allocation8 + $0x10] sm:$0xff] }
 0xd75   :  { %v739_v3 = vpop.permute.xlu1 %738 }
 0xd76   :  { %v2071_v4 = vadd.f32 %v739_v3, %v731_v2  ;;  %v1106_v2 = vld [vmem:[#allocation8 + $0x18] sm:$0xff] }
 0xd77   :  { %v1557_v3 = vpack.c.bf16 %v1106_v2, %v1105_v62 }
 0xd78   :  { %1617 = vtanh.f32 %v2071_v4  ;;  %v842_v26 = vrot.slane %v2071_v4, 6 }
 0xd82   :  { %v1618_v5 = vpop.eup %1617 }
 0xd83   :  { %744 = vrot.lane.b32.xlu0 %v1618_v5, %s1816_s3 }
 0xdf5   :  { %v745_v6 = vpop.permute.xlu0 %744 }
 0xdf6   :  { %v747_v7 = vmul.f32 %v745_v6, %v728_v59  ;;  %v1103_v59 = vld [vmem:[#allocation8] sm:$0xff] }
 0xdf7   :  { %v1553_v63 = vpack.c.bf16 %v1104_v61, %v1103_v59 }
 0xdf8   :  { %749 = vrot.lane.b32.xlu1 %v747_v7, %s1817_s11 }
 0xdf9   :  { %1554 = vmatprep.subr.bf16.mxu1 %v1553_v63 }
 0xe6a   :  { %v750_v8 = vpop.permute.xlu1 %749 }
 0xe6b   :  { %752 = vst.msk [vmem:[#allocation10 + $0x8] sm:$0x3] %vm290_vm5, %v750_v8  ;;  %1455 = vmatmul.mubr.msk.f32.vlgmr.msra.gmra.mrb[6].mxu0 %vm96_vm1, %v750_v8 }
 0xe6c   :  { %1549 = vmatpush3.bf16.msra.mxu0 %v1944_v9  ;;  %1476 = vmatprep.mubr.msk.f32.mxu0 %vm1814_vm0, %v1815_v1 }
 0xe6d   :  { %1550 = vmatprep.subr.bf16.mxu0 %v1813_v0 }
 0xe70   :  { %1552 = vmatpush3.bf16.msra.mxu0 %v1951_v14 }
 0xe71   :  { %1561 = vmatprep.subr.bf16.mxu0 %v1813_v0 }
 0xf3e   :  { %v826_v10 = vpop.f32.mrb[6].mxu0 }
 0xf3f   :  { %v831_v12 = vrot.slane %v826_v10, 6  ;;  %v1456_v13 = vpop.f32.mrb[7].mxu0 }
 0xf41   :  { %v833_v16 = vadd.f32 %v831_v12, %v1977_v19 }
 0xf43   :  { %v1318_v17 = vmul.f32 -1.442695, %v833_v16 }
 0xf45   :  { %1619 = vpow2.f32 %v1318_v17 }
 0xf46   :  { %1621 = vtanh.f32 %v833_v16 }
 0xf4f   :  { %v1620_v18 = vpop.eup %1619 }
 0xf50   :  { %v838_v20 = vadd.f32 1.0, %v1620_v18  ;;  %v1622_v9 = vpop.eup %1621 }
 0xf52   :  { %1623 = vrcp.f32 %v838_v20 }
 0xf5c   :  { %v1624_v23 = vpop.eup %1623 }
 0xf5d   :  { %v841_v24 = vsel %vm1982_vm4, %v1622_v9, %v1624_v23 }
 0xf5e   :  { %846 = vrot.lane.b32.xlu0 %v841_v24, %s1816_s3  ;;  %v844_v27 = vmul.f32 %v842_v26, %v841_v24 }
 0xfd0   :  { %v847_v14 = vpop.permute.xlu0 %846 }
 0xfd1   :  { %v849_v0 = vmul.f32 %v847_v14, %v841_v24 }
 0xfd3   :  { %851 = vrot.lane.b32.xlu1 %v849_v0, %s1817_s11 }
0x1045   :  { %v852_v28 = vpop.permute.xlu1 %851 }
0x1046   :  { %v2090_v30 = vadd.f32 %v852_v28, %v844_v27 }
0x1048   :  { %1625 = vtanh.f32 %v2090_v30  ;;  %v958_v49 = vrot.slane %v2090_v30, 6 }
0x1052   :  { %v1626_v31 = vpop.eup %1625 }
0x1053   :  { %857 = vrot.lane.b32.xlu0 %v1626_v31, %s1816_s3 }
0x10c5   :  { %v858_v32 = vpop.permute.xlu0 %857 }
0x10c6   :  { %v2094_v33 = vmul.f32 %v858_v32, %v841_v24 }
0x10c8   :  { %v871_v34 = vrot.slane %v2094_v33, 2 }
0x10ca   :  { %872 = vrot.lane.b32.xlu1 %v871_v34, %s1817_s11 }
0x113c   :  { %v873_v35 = vpop.permute.xlu1 %872 }
0x113d   :  { %1466 = vmatmul.mubr.msk.f32.vlgmr.msra.gmra.mrb[6].mxu1 %vm96_vm1, %v873_v35 }
0x113e   :  { %1487 = vmatprep.mubr.msk.f32.mxu1 %vm96_vm1, %v1946_v11  ;;  %1556 = vmatpush3.bf16.msra.mxu1 %v1553_v63 }
0x113f   :  { %1558 = vmatprep.subr.bf16.mxu1 %v1557_v3 }
0x1142   :  { %1560 = vmatpush3.bf16.msra.mxu1 %v1557_v3 }
0x1145   :  { %1488 = vmatmul.mubr.msk.f32.vlgmr.msra.gmra.mrb[8].mxu1 %vm96_vm1, %v1955_v15 }
0x1210   :  { %v942_v36 = vpop.f32.mrb[6].mxu1 }
0x1211   :  { %v947_v38 = vrot.slane %v942_v36, 4  ;;  %v1467_v39 = vpop.f32.mrb[7].mxu1 }
0x1213   :  { %v949_v40 = vadd.f32 %v947_v38, %v1977_v19 }
0x1215   :  { %v1320_v41 = vmul.f32 -1.442695, %v949_v40 }
0x1217   :  { %1627 = vpow2.f32 %v1320_v41 }
0x1218   :  { %1629 = vtanh.f32 %v949_v40 }
0x1221   :  { %v1628_v42 = vpop.eup %1627 }
0x1222   :  { %v954_v22 = vadd.f32 1.0, %v1628_v42  ;;  %v1630_v43 = vpop.eup %1629 }
0x1224   :  { %1631 = vrcp.f32 %v954_v22 }
0x122e   :  { %v1632_v45 = vpop.eup %1631 }
0x122f   :  { %v957_v46 = vsel %vm1982_vm4, %v1630_v43, %v1632_v45 }
0x1230   :  { %962 = vrot.lane.b32.xlu0 %v957_v46, %s1816_s3  ;;  %v960_v50 = vmul.f32 %v958_v49, %v957_v46 }
0x12a2   :  { %v963_v48 = vpop.permute.xlu0 %962 }
0x12a3   :  { %v965_v11 = vmul.f32 %v963_v48, %v957_v46 }
0x12a5   :  { %967 = vrot.lane.b32.xlu1 %v965_v11, %s1817_s11 }
0x1317   :  { %v968_v51 = vpop.permute.xlu1 %967 }
0x1318   :  { %v970_v52 = vadd.f32 %v968_v51, %v960_v50 }
0x131a   :  { %1633 = vtanh.f32 %v970_v52 }
0x1324   :  { %v1634_v53 = vpop.eup %1633 }
0x1325   :  { %973 = vrot.lane.b32.xlu0 %v1634_v53, %s1816_s3 }
0x1397   :  { %v974_v54 = vpop.permute.xlu0 %973 }
0x1398   :  { %v976_v55 = vmul.f32 %v974_v54, %v957_v46 }
0x139a   :  { %v987_v56 = vrot.slane %v976_v55, 4 }
0x139c   :  { %988 = vrot.lane.b32.xlu1 %v987_v56, %s1817_s11 }
0x140e   :  { %v989_v58 = vpop.permute.xlu1 %988 }
0x140f   :  { %1477 = vmatmul.mubr.msk.f32.vlgmr.msra.gmra.mrb[8].mxu0 %vm96_vm1, %v989_v58 }
0x1410   :  { %1494 = vmatprep.mubr.msk.f32.mxu0 %vm1814_vm0, %v1815_v1 }
0x14e2   :  { %v1058_v5 = vpop.f32.mrb[8].mxu0 }
0x14e3   :  { %v1063_v6 = vrot.slane %v1058_v5, 2  ;;  %v1478_v7 = vpop.f32.mrb[9].mxu0 }
0x14e5   :  { %v1065_v8 = vadd.f32 %v1063_v6, %v1977_v19  ;;  %v1489_v19 = vpop.f32.mrb[8].mxu1 }
0x14e6   :  { %v1183_v20 = vmax.f32 %v1489_v19, 0.0  ;;  %v1173_v9 = vpop.f32.mrb[9].mxu1 }
0x14e7   :  { %v1322_v10 = vmul.f32 -1.442695, %v1065_v8  ;;  %v1182_v23 = vmax.f32 %v1173_v9, 0.0 }
0x14e9   :  { %1635 = vpow2.f32 %v1322_v10  ;;  %v1562_v24 = vpack.c.bf16 %v1183_v20, %v1182_v23 }
0x14ea   :  { %1637 = vtanh.f32 %v1065_v8 }
0x14eb   :  { %1563 = vmatpush3.bf16.xpose.msra.mxu0 %v1562_v24 }
0x14f2   :  { %1495 = vmatmul.mubr.f32.vlgmr.msra.gmra.mrb[10].mxu0 %v1184_v29 }
0x14f3   :  { %v1636_v1 = vpop.eup %1635 }
0x14f4   :  { %v1070_v12 = vadd.f32 1.0, %v1636_v1  ;;  %v1638_v13 = vpop.eup %1637 }
0x14f6   :  { %1639 = vrcp.f32 %v1070_v12 }
0x1500   :  { %v1640_v16 = vpop.eup %1639 }
0x1501   :  { %v1073_v17 = vsel %vm1982_vm4, %v1638_v13, %v1640_v16 }
0x1502   :  { %1078 = vrot.lane.b32.xlu0 %v1073_v17, %s1816_s3 }
0x1574   :  { %v1079_v18 = vpop.permute.xlu0 %1078 }
0x1575   :  { %v1081_v15 = vmul.f32 %v1079_v18, %v1073_v17 }
0x1577   :  { %1083 = vrot.lane.b32.xlu1 %v1081_v15, %s1817_s11 }
0x157b   :  { %293 = vrot.lane.b32.xlu1 %v1990_v37, %s1818_s12  ;;  %v1074_v37 = vrot.slane %v970_v52, 6 }
0x157f   :  { %524 = vrot.lane.b32.xlu1 %v2030_v21, %s1818_s12  ;;  %v1076_v21 = vmul.f32 %v1074_v37, %v1073_v17 }
0x1583   :  { %754 = vrot.lane.b32.xlu1 %v2071_v4, %s1818_s12 }
0x1587   :  { %983 = vrot.lane.b32.xlu1 %v970_v52, %s1818_s12 }
0x158b   :  { %401 = vrot.lane.b32.xlu1 %v2013_v60, %s1817_s11 }
0x158f   :  { %635 = vrot.lane.b32.xlu1 %v2055_v47, %s1817_s11 }
0x1593   :  { %978 = vrot.lane.b32.xlu1 %v976_v55, %s1817_s11 }
0x15e9   :  { %v1084_v14 = vpop.permute.xlu1 %1083 }
0x15ea   :  { %v1086_v4 = vadd.f32 %v1084_v14, %v1076_v21 }
0x15ec   :  { %1641 = vtanh.f32 %v1086_v4 }
0x15ed   :  { %v294_v0 = vpop.permute.xlu1 %293 }
0x15ee   :  { %296 = vst.msk [vmem:[#allocation11] sm:$0x3] %vm290_vm5, %v294_v0 }
0x15f1   :  { %v525_v26 = vpop.permute.xlu1 %524 }
0x15f2   :  { %527 = vst.msk [vmem:[#allocation11] sm:$0x30] %vm521_vm6, %v525_v26 }
0x15f5   :  { %v755_v27 = vpop.permute.xlu1 %754 }
0x15f6   :  { %v1642_v28 = vpop.eup %1641  ;;  %757 = vst.msk [vmem:[#allocation11 + $0x8] sm:$0x3] %vm290_vm5, %v755_v27 }
0x15f7   :  { %1089 = vrot.lane.b32.xlu0 %v1642_v28, %s1816_s3 }
0x15f9   :  { %v984_v60 = vpop.permute.xlu1 %983 }
0x15fa   :  { %986 = vst.msk [vmem:[#allocation11 + $0x8] sm:$0x30] %vm521_vm6, %v984_v60 }
0x15fb   :  { %407 = vrot.lane.b32.xlu0 %v2009_v57, %s1818_s12  ;;  %v1251_v57 = vpop.f32.mrb[10].mxu0 }
0x15fc   :  { %1256 = vst.msk [vmem:[#allocation13] sm:$0x1] %vm1255_vm9, %v1251_v57 }
0x15fd   :  { %v402_v47 = vpop.permute.xlu1 %401 }
0x15fe   :  { %405 = vst.msk [vmem:[#allocation10] sm:$0xc] %vm404_vm7, %v402_v47 }
0x15ff   :  { %641 = vrot.lane.b32.xlu0 %v2051_v44, %s1818_s12  ;;  %v1496_v44 = vpop.f32.mrb[11].mxu0 }
0x1601   :  { %v636_v31 = vpop.permute.xlu1 %635 }
0x1602   :  { %639 = vst.msk [vmem:[#allocation10] sm:$0xc0] %vm638_vm8, %v636_v31 }
0x1603   :  { %867 = vrot.lane.b32.xlu0 %v2090_v30, %s1818_s12 }
0x1605   :  { %v979_v32 = vpop.permute.xlu1 %978 }
0x1606   :  { %981 = vst.msk [vmem:[#allocation10 + $0x8] sm:$0x30] %vm521_vm6, %v979_v32 }
0x1607   :  { %1099 = vrot.lane.b32.xlu0 %v1086_v4, %s1818_s12 }
0x160b   :  { %518 = vrot.lane.b32.xlu0 %v2034_v25, %s1817_s11 }
0x160f   :  { %862 = vrot.lane.b32.xlu0 %v2094_v33, %s1817_s11 }
0x1669   :  { %v1090_v34 = vpop.permute.xlu0 %1089 }
0x166a   :  { %v1092_v35 = vmul.f32 %v1090_v34, %v1073_v17 }
0x166c   :  { %1094 = vrot.lane.b32.xlu0 %v1092_v35, %s1817_s11 }
0x166d   :  { %v408_v30 = vpop.permute.xlu0 %407 }
0x166e   :  { %410 = vst.msk [vmem:[#allocation11] sm:$0xc] %vm404_vm7, %v408_v30 }
0x1671   :  { %v642_v36 = vpop.permute.xlu0 %641 }
0x1672   :  { %644 = vst.msk [vmem:[#allocation11] sm:$0xc0] %vm638_vm8, %v642_v36 }
0x1675   :  { %v868_v38 = vpop.permute.xlu0 %867 }
0x1676   :  { %870 = vst.msk [vmem:[#allocation11 + $0x8] sm:$0xc] %vm404_vm7, %v868_v38 }
0x1679   :  { %v1100_v25 = vpop.permute.xlu0 %1099 }
0x167a   :  { %1102 = vst.msk [vmem:[#allocation11 + $0x8] sm:$0xc0] %vm638_vm8, %v1100_v25 }
0x167b   :  { %1742 = shalt.err (!%p1739_p8)
}
0x167c   :  { %s1743_s30 = scalar_lea.hbm %s2210_s7, 256 }
0x167d   :  { %p1744_p9 = scmp.ne.s32.totalorder %s2210_s7, %s1743_s30  ;;  %p1747_p10 = scmp.lt.u32.totalorder %s1743_s30, %s2210_s7 }
0x167f   :  { %p1749_p11 = pnand %p1747_p10, %p1744_p9 }
0x1681   :  { %1752 = shalt.err (!%p1749_p11)
}
0x1682   :  { %1280 = dma.vmem_to_hbm [thread:$0]  %s1275_s15, 256, %s2210_s7, [#allocation12], %s1809_s17, %s1809_s17, %s1810_s18  }
0x1683   :  { %s1753_s29 = scalar_lea.vmem %s1288_s19, 16  ;;  %s1757_s1 = scalar_lea.vmem %s1288_s19, 32 }
0x1684   :  { %p1754_p12 = scmp.ne.s32.totalorder %s1288_s19, %s1753_s29  ;;  %p1758_p13 = scmp.lt.s32.totalorder %s1288_s19, %s1288_s19 }
0x1685   :  { %p1759_p0 = scmp.lt.s32.totalorder %s1757_s1, %s1753_s29 }
0x1687   :  { %p1760_p1 = por %p1759_p0, %p1758_p13 }
0x1689   :  { %p1761_p2 = pnand %p1760_p1, %p1754_p12 }
0x168b   :  { %1764 = shalt.err (!%p1761_p2)
}
0x168c   :  { %s1765_s9 = scalar_lea.hbm %s2211_s8, 16 }
0x168d   :  { %p1766_p3 = scmp.ne.s32.totalorder %s2211_s8, %s1765_s9  ;;  %p1769_p4 = scmp.lt.u32.totalorder %s1765_s9, %s2211_s8 }
0x168f   :  { %p1771_p5 = pnand %p1769_p4, %p1766_p3 }
0x1691   :  { %1774 = shalt.err (!%p1771_p5)
}
0x1692   :  { %1290 = dma.vmem_to_hbm [thread:$0]  %s1288_s19, 16, %s2211_s8, [#allocation12]   ;;  %v519_v33 = vpop.permute.xlu0 %518 }
0x1693   :  { %522 = vst.msk [vmem:[#allocation10] sm:$0x30] %vm521_vm6, %v519_v33  ;;  %s1821_s13 = smov [#allocation10]  }
0x1694   :  { %s1262_s14 = sshll.u32 %s1821_s13, 4  ;;  %s1263_s14 = int_to_ptr.vmem [resolvable:$true] %s1262_s14 }
0x1695   :  { %s1775_s5 = scalar_lea.vmem %s1263_s14, 256  ;;  %p1780_p7 = scmp.lt.s32.totalorder %s1263_s14, %s1263_s14 }
0x1696   :  { %v863_v39 = vpop.permute.xlu0 %862  ;;  %p1776_p6 = scmp.ne.s32.totalorder %s1263_s14, %s1775_s5  ;;  %p1781_p8 = scmp.lt.s32.totalorder %s1775_s5, %s1775_s5 }
0x1697   :  { %865 = vst.msk [vmem:[#allocation10 + $0x8] sm:$0xc] %vm404_vm7, %v863_v39 }
0x1698   :  { %p1782_p9 = por %p1781_p8, %p1780_p7 }
0x169a   :  { %p1783_p10 = pnand %p1782_p9, %p1776_p6 }
0x16de   :  { %v1095_v40 = vpop.permute.xlu0 %1094 }
0x16df   :  { %1097 = vst.msk [vmem:[#allocation10 + $0x8] sm:$0xc0] %vm638_vm8, %v1095_v40 }
0x16e0   :  { %1786 = shalt.err (!%p1783_p10)
}
0x16e1   :  { %s1787_s16 = scalar_lea.hbm %s2209_s6, 256 }
0x16e2   :  { %p1788_p11 = scmp.ne.s32.totalorder %s2209_s6, %s1787_s16  ;;  %p1791_p12 = scmp.lt.u32.totalorder %s1787_s16, %s2209_s6 }
0x16e4   :  { %p1793_p13 = pnand %p1791_p12, %p1788_p11 }
0x16e6   :  { %1796 = shalt.err (!%p1793_p13)
}
0x16e7   :  { %1268 = dma.vmem_to_hbm [thread:$0]  %s1263_s14, 256, %s2209_s6, [#allocation4], %s1809_s17, %s1809_s17, %s1810_s18  }
0x16e8   :  { %1803 = dma.done.wait [#allocation4], 256  }
0x16e9   :  { %1804 = vsyncadd [#allocation4], 4294967040 }
0x16ea   :  { %1805 = dma.done.wait [#allocation12], 272  }
0x16eb   :  { %1806 = vsyncadd [#allocation12], 4294967024 }
0x16ec   :  { %1300 = vsyncpa [#allocation3], 1 }
0x16ed   :  { %1301 = vsyncpa [#allocation6], 1 }
0x16ee   :  { %1302 = vsyncpa [#allocation9], 1 }
0x16ef   :  { %1303 = vsyncpa [#allocation4], 1 }
0x16f0   :  { %1304 = vsyncpa [#allocation12], 1 }

</bundles_post_ra>
